<compile_context>
chip_gen: v7x
topology: tpu7x:2x2x1
jax: 0.10.0
libtpu: 0.0.40
codegen_flags: <defaults>
</compile_context>

<pallas_src>
import jax
import jax.numpy as jnp
from jax.experimental import pallas as pl
from jax.experimental.pallas import tpu as pltpu  # noqa: F401  (TPU backend)

# Small shapes consistent with the module (512 -> 128 channels, w_dim -> 32).
N_CHAN = 128
W_DIM = 32
RES = 4
HW = RES * RES
BATCH = 2
RGB_PAD = 128          # lane-dense ToRGB output width (first 3 lanes = RGB)
EPS = 1e-5             # nn.InstanceNorm2d default


def stynthesis_kernel(patches_ref, conv_w_ref, conv_b_ref,
                      noise_ref, w_ref, noise_scale_ref,
                      aff_w_ref, aff_b_ref, rgb_w_ref, rgb_b_ref,
                      out_ref):
    B = noise_ref.shape[0]
    C = conv_w_ref.shape[1]

    # SynthesisBlock.conv : 3x3 conv (padding=1) as ONE im2col matmul (MXU).
    # The conv input is a broadcast of `const`, i.e. batch-invariant.
    y0 = jnp.dot(patches_ref[...], conv_w_ref[...],
                 preferred_element_type=jnp.float32) + conv_b_ref[...]      # (HW, C)

    # AdaIN affine for the whole batch in one dot: (B, W_DIM) @ (W_DIM, 2C).
    style = jnp.dot(w_ref[...], aff_w_ref[...],
                    preferred_element_type=jnp.float32) + aff_b_ref[...]    # (B, 2C)

    ns = noise_scale_ref[...]                                               # (1, C)

    for b in range(B):   # tiny static unroll; only cheap elementwise work inside
        # x + noise_scale * noise   (noise shared across channels)
        y = y0 + ns * noise_ref[b]                                          # (HW, C)

        # InstanceNorm2d (affine=False): per-channel mean / biased variance
        mean = jnp.mean(y, axis=0, keepdims=True)                           # (1, C)
        var = jnp.mean((y - mean) ** 2, axis=0, keepdims=True)              # (1, C)
        y_n = (y - mean) * jax.lax.rsqrt(var + EPS)

        # AdaIN modulation + leaky_relu(0.2)
        ys = style[b:b + 1, :C]
        yb = style[b:b + 1, C:]
        y = ys * y_n + yb
        y = jnp.where(y > 0, y, 0.2 * y)

        # ToRGB: 1x1 conv as a matmul into a lane-dense 128-wide slab + tanh
        rgb = jnp.dot(y, rgb_w_ref[...],
                      preferred_element_type=jnp.float32) + rgb_b_ref[...]  # (HW, 128)
        out_ref[b] = jnp.tanh(rgb)


@jax.jit
def stynthesis_forward(w, params, noise):
    B = w.shape[0]

    # Batch-invariant im2col of the (tiny) const input: (HW, 9*Cin) ~ 74 KB,
    # built once per call (not per batch).
    const = params['const'][0]                                   # (C, 4, 4)
    cp = jnp.pad(const, ((0, 0), (1, 1), (1, 1)))                # (C, 6, 6)
    patches = jnp.stack([cp[:, ky:ky + RES, kx:kx + RES]
                         for ky in range(3) for kx in range(3)],
                        axis=1)                                  # (C, 9, H, W)
    patches = patches.reshape(N_CHAN * 9, HW).T                  # (HW, 9C)

    conv_w = params['conv_w'].reshape(N_CHAN, N_CHAN * 9).T      # (9C, C)
    conv_b = params['conv_b'].reshape(1, N_CHAN)
    noise_scale = params['noise_scale'].reshape(1, N_CHAN)
    aff_w = params['aff_w']                                      # (W_DIM, 2C)
    aff_b = params['aff_b'].reshape(1, 2 * N_CHAN)

    # ToRGB weights padded to a lane-dense 128-wide output (zeros past ch 3).
    rgb_w = jnp.pad(params['rgb_w'].reshape(3, N_CHAN).T,
                    ((0, 0), (0, RGB_PAD - 3)))                  # (C, 128)
    rgb_b = jnp.pad(params['rgb_b'].reshape(1, 3),
                    ((0, 0), (0, RGB_PAD - 3)))                  # (1, 128)

    # Noise pre-broadcast to channels-last (B, HW, C): avoids a 1-lane layout.
    noise_b = jnp.broadcast_to(noise.reshape(B, HW, 1), (B, HW, N_CHAN))

    out = pl.pallas_call(
        stynthesis_kernel,
        out_shape=jax.ShapeDtypeStruct((B, HW, RGB_PAD), jnp.float32),
    )(patches, conv_w, conv_b, noise_b, w, noise_scale,
      aff_w, aff_b, rgb_w, rgb_b)

    # (B, HW, 128) -> NCHW (B, 3, H, W) like the PyTorch module.
    return out[..., :3].reshape(B, RES, RES, 3).transpose(0, 3, 1, 2)


def init_params(key):
    ks = jax.random.split(key, 7)
    p = {}
    p['const'] = jax.random.normal(ks[0], (1, N_CHAN, RES, RES), jnp.float32)
    p['conv_w'] = jax.random.normal(ks[1], (N_CHAN, N_CHAN, 3, 3), jnp.float32) \
        * (1.0 / (3.0 * float(N_CHAN) ** 0.5))
    p['conv_b'] = jax.random.normal(ks[2], (N_CHAN,), jnp.float32) * 0.1
    p['noise_scale'] = jnp.full((N_CHAN,), 0.1, jnp.float32)
    p['aff_w'] = jax.random.normal(ks[3], (W_DIM, 2 * N_CHAN), jnp.float32) \
        * (1.0 / float(W_DIM) ** 0.5)
    p['aff_b'] = jax.random.normal(ks[4], (2 * N_CHAN,), jnp.float32) * 0.1
    p['rgb_w'] = jax.random.normal(ks[5], (3, N_CHAN, 1, 1), jnp.float32) \
        * (1.0 / float(N_CHAN) ** 0.5)
    p['rgb_b'] = jax.random.normal(ks[6], (3,), jnp.float32) * 0.1
    return p


def reference_forward(w, params, noise):
    """Pure-JAX NCHW reference mirroring the PyTorch forward (high precision)."""
    HI = jax.lax.Precision.HIGHEST
    B = w.shape[0]
    x = jnp.broadcast_to(params['const'], (B, N_CHAN, RES, RES))
    y = jax.lax.conv_general_dilated(
        x, params['conv_w'], (1, 1), 'SAME',
        dimension_numbers=('NCHW', 'OIHW', 'NCHW'), precision=HI)
    y = y + params['conv_b'][None, :, None, None]
    y = y + params['noise_scale'][None, :, None, None] * noise[:, None, :, :]
    style = jnp.dot(w, params['aff_w'], precision=HI) + params['aff_b']
    ys = style[:, :N_CHAN][:, :, None, None]
    yb = style[:, N_CHAN:][:, :, None, None]
    mean = y.mean(axis=(2, 3), keepdims=True)
    var = ((y - mean) ** 2).mean(axis=(2, 3), keepdims=True)   # biased, like InstanceNorm2d
    yn = (y - mean) / jnp.sqrt(var + EPS)
    y = ys * yn + yb
    y = jnp.where(y > 0, y, 0.2 * y)
    rgb = jax.lax.conv_general_dilated(
        y, params['rgb_w'], (1, 1), 'SAME',
        dimension_numbers=('NCHW', 'OIHW', 'NCHW'), precision=HI)
    rgb = rgb + params['rgb_b'][None, :, None, None]
    return jnp.tanh(rgb)


if __name__ == "__main__":
    key = jax.random.PRNGKey(0)
    kp, kw, kn = jax.random.split(key, 3)
    params = init_params(kp)
    w = jax.random.normal(kw, (BATCH, W_DIM), jnp.float32)
    # TODO(synk): torch.randn noise inside forward is inherently stochastic;
    # it is generated here with jax.random and fed in (same broadcast semantics).
    noise = jax.random.normal(kn, (BATCH, RES, RES), jnp.float32)

    out = stynthesis_forward(w, params, noise)
    out = jax.block_until_ready(out)
    assert out.shape == (BATCH, 3, RES, RES), out.shape

    ref = reference_forward(w, params, noise)
    err = float(jnp.max(jnp.abs(out - ref)))
    if err > 2e-2:
        raise AssertionError(f"mismatch vs reference: max abs err {err}")

    print("KERNEL_OK")
</pallas_src>

<mosaic_0001>
module attributes {stable_mosaic.version = 11 : i64} {
  func.func @stynthesis_kernel(%arg0: memref<16x1152xf32, #tpu.memory_space<vmem>>, %arg1: memref<1152x128xf32, #tpu.memory_space<vmem>>, %arg2: memref<1x128xf32, #tpu.memory_space<vmem>>, %arg3: memref<2x16x128xf32, #tpu.memory_space<vmem>>, %arg4: memref<2x32xf32, #tpu.memory_space<vmem>>, %arg5: memref<1x128xf32, #tpu.memory_space<vmem>>, %arg6: memref<32x256xf32, #tpu.memory_space<vmem>>, %arg7: memref<1x256xf32, #tpu.memory_space<vmem>>, %arg8: memref<128x128xf32, #tpu.memory_space<vmem>>, %arg9: memref<1x128xf32, #tpu.memory_space<vmem>>, %arg10: memref<2x16x128xf32, #tpu.memory_space<vmem>>) attributes {dimension_semantics = [], scalar_prefetch = 0 : i64, scratch_operands = 0 : i64, tpu.core_type = #tpu.core_type<tc>} {
    %c0 = arith.constant 0 : index
    %c0_0 = arith.constant 0 : index
    %0 = vector.load %arg0[%c0, %c0_0] : memref<16x1152xf32, #tpu.memory_space<vmem>>, vector<16x1152xf32>
    %c0_1 = arith.constant 0 : index
    %c0_2 = arith.constant 0 : index
    %1 = vector.load %arg1[%c0_1, %c0_2] : memref<1152x128xf32, #tpu.memory_space<vmem>>, vector<1152x128xf32>
    %cst = arith.constant dense<0.000000e+00> : vector<16x128xf32>
    %2 = tpu.matmul %0, %1, %cst {dimension_numbers = #tpu.dot_dimension_numbers<[1], [0], [0], [1], [0, 0, 1, 1], [], []>} : vector<16x1152xf32>, vector<1152x128xf32>, vector<16x128xf32> -> vector<16x128xf32>
    %c0_3 = arith.constant 0 : index
    %c0_4 = arith.constant 0 : index
    %3 = vector.load %arg2[%c0_3, %c0_4] : memref<1x128xf32, #tpu.memory_space<vmem>>, vector<1x128xf32>
    %4 = vector.broadcast %3 : vector<1x128xf32> to vector<16x128xf32>
    %5 = arith.addf %2, %4 : vector<16x128xf32>
    %c0_5 = arith.constant 0 : index
    %c0_6 = arith.constant 0 : index
    %6 = vector.load %arg4[%c0_5, %c0_6] : memref<2x32xf32, #tpu.memory_space<vmem>>, vector<2x32xf32>
    %c0_7 = arith.constant 0 : index
    %c0_8 = arith.constant 0 : index
    %7 = vector.load %arg6[%c0_7, %c0_8] : memref<32x256xf32, #tpu.memory_space<vmem>>, vector<32x256xf32>
    %cst_9 = arith.constant dense<0.000000e+00> : vector<2x256xf32>
    %8 = tpu.matmul %6, %7, %cst_9 {dimension_numbers = #tpu.dot_dimension_numbers<[1], [0], [0], [1], [0, 0, 1, 1], [], []>} : vector<2x32xf32>, vector<32x256xf32>, vector<2x256xf32> -> vector<2x256xf32>
    %c0_10 = arith.constant 0 : index
    %c0_11 = arith.constant 0 : index
    %9 = vector.load %arg7[%c0_10, %c0_11] : memref<1x256xf32, #tpu.memory_space<vmem>>, vector<1x256xf32>
    %10 = vector.broadcast %9 : vector<1x256xf32> to vector<2x256xf32>
    %11 = arith.addf %8, %10 : vector<2x256xf32>
    %c0_12 = arith.constant 0 : index
    %c0_13 = arith.constant 0 : index
    %12 = vector.load %arg5[%c0_12, %c0_13] : memref<1x128xf32, #tpu.memory_space<vmem>>, vector<1x128xf32>
    %c0_14 = arith.constant 0 : index
    %c0_15 = arith.constant 0 : index
    %c0_16 = arith.constant 0 : index
    %13 = vector.load %arg3[%c0_14, %c0_15, %c0_16] : memref<2x16x128xf32, #tpu.memory_space<vmem>>, vector<1x16x128xf32>
    %14 = vector.shape_cast %13 : vector<1x16x128xf32> to vector<16x128xf32>
    %15 = vector.broadcast %12 : vector<1x128xf32> to vector<16x128xf32>
    %16 = arith.mulf %15, %14 : vector<16x128xf32>
    %17 = arith.addf %5, %16 : vector<16x128xf32>
    %cst_17 = arith.constant dense<0.000000e+00> : vector<128xf32>
    %18 = vector.multi_reduction <add>, %17, %cst_17 [0] : vector<16x128xf32> to vector<128xf32>
    %19 = vector.shape_cast %18 : vector<128xf32> to vector<1x128xf32>
    %cst_18 = arith.constant 1.600000e+01 : f32
    %20 = vector.broadcast %cst_18 : f32 to vector<1x128xf32>
    %21 = arith.divf %19, %20 : vector<1x128xf32>
    %22 = vector.broadcast %21 : vector<1x128xf32> to vector<16x128xf32>
    %23 = arith.subf %17, %22 : vector<16x128xf32>
    %24 = arith.mulf %23, %23 : vector<16x128xf32>
    %cst_19 = arith.constant dense<0.000000e+00> : vector<128xf32>
    %25 = vector.multi_reduction <add>, %24, %cst_19 [0] : vector<16x128xf32> to vector<128xf32>
    %26 = vector.shape_cast %25 : vector<128xf32> to vector<1x128xf32>
    %cst_20 = arith.constant 1.600000e+01 : f32
    %27 = vector.broadcast %cst_20 : f32 to vector<1x128xf32>
    %28 = arith.divf %26, %27 : vector<1x128xf32>
    %29 = vector.broadcast %21 : vector<1x128xf32> to vector<16x128xf32>
    %30 = arith.subf %17, %29 : vector<16x128xf32>
    %cst_21 = arith.constant 9.99999974E-6 : f32
    %31 = vector.broadcast %cst_21 : f32 to vector<1x128xf32>
    %32 = arith.addf %28, %31 : vector<1x128xf32>
    %33 = math.rsqrt %32 : vector<1x128xf32>
    %34 = vector.broadcast %33 : vector<1x128xf32> to vector<16x128xf32>
    %35 = arith.mulf %30, %34 : vector<16x128xf32>
    %36 = vector.extract_strided_slice %11 {offsets = [0, 0], sizes = [1, 128], strides = [1, 1]} : vector<2x256xf32> to vector<1x128xf32>
    %37 = vector.extract_strided_slice %11 {offsets = [0, 128], sizes = [1, 128], strides = [1, 1]} : vector<2x256xf32> to vector<1x128xf32>
    %38 = vector.broadcast %36 : vector<1x128xf32> to vector<16x128xf32>
    %39 = arith.mulf %38, %35 : vector<16x128xf32>
    %40 = vector.broadcast %37 : vector<1x128xf32> to vector<16x128xf32>
    %41 = arith.addf %39, %40 : vector<16x128xf32>
    %cst_22 = arith.constant 0.000000e+00 : f32
    %42 = vector.broadcast %cst_22 : f32 to vector<16x128xf32>
    %43 = arith.cmpf ogt, %41, %42 : vector<16x128xf32>
    %cst_23 = arith.constant 2.000000e-01 : f32
    %44 = vector.broadcast %cst_23 : f32 to vector<16x128xf32>
    %45 = arith.mulf %44, %41 : vector<16x128xf32>
    %46 = arith.select %43, %41, %45 : vector<16x128xi1>, vector<16x128xf32>
    %c0_24 = arith.constant 0 : index
    %c0_25 = arith.constant 0 : index
    %47 = vector.load %arg8[%c0_24, %c0_25] : memref<128x128xf32, #tpu.memory_space<vmem>>, vector<128x128xf32>
    %cst_26 = arith.constant dense<0.000000e+00> : vector<16x128xf32>
    %48 = tpu.matmul %46, %47, %cst_26 {dimension_numbers = #tpu.dot_dimension_numbers<[1], [0], [0], [1], [0, 0, 1, 1], [], []>} : vector<16x128xf32>, vector<128x128xf32>, vector<16x128xf32> -> vector<16x128xf32>
    %c0_27 = arith.constant 0 : index
    %c0_28 = arith.constant 0 : index
    %49 = vector.load %arg9[%c0_27, %c0_28] : memref<1x128xf32, #tpu.memory_space<vmem>>, vector<1x128xf32>
    %50 = vector.broadcast %49 : vector<1x128xf32> to vector<16x128xf32>
    %51 = arith.addf %48, %50 : vector<16x128xf32>
    %52 = math.tanh %51 : vector<16x128xf32>
    %c0_29 = arith.constant 0 : index
    %c0_30 = arith.constant 0 : index
    %c0_31 = arith.constant 0 : index
    %53 = vector.load %arg10[%c0_29, %c0_30, %c0_31] : memref<2x16x128xf32, #tpu.memory_space<vmem>>, vector<1x16x128xf32>
    %54 = vector.shape_cast %53 : vector<1x16x128xf32> to vector<16x128xf32>
    %55 = vector.shape_cast %52 : vector<16x128xf32> to vector<1x16x128xf32>
    tpu.vector_store %arg10[%c0_29, %c0_30, %c0_31], %55 {strides = array<i32>} : memref<2x16x128xf32, #tpu.memory_space<vmem>>, vector<1x16x128xf32>,
    %c1 = arith.constant 1 : index
    %c0_32 = arith.constant 0 : index
    %c0_33 = arith.constant 0 : index
    %56 = vector.load %arg3[%c1, %c0_32, %c0_33] : memref<2x16x128xf32, #tpu.memory_space<vmem>>, vector<1x16x128xf32>
    %57 = vector.shape_cast %56 : vector<1x16x128xf32> to vector<16x128xf32>
    %58 = vector.broadcast %12 : vector<1x128xf32> to vector<16x128xf32>
    %59 = arith.mulf %58, %57 : vector<16x128xf32>
    %60 = arith.addf %5, %59 : vector<16x128xf32>
    %cst_34 = arith.constant dense<0.000000e+00> : vector<128xf32>
    %61 = vector.multi_reduction <add>, %60, %cst_34 [0] : vector<16x128xf32> to vector<128xf32>
    %62 = vector.shape_cast %61 : vector<128xf32> to vector<1x128xf32>
    %cst_35 = arith.constant 1.600000e+01 : f32
    %63 = vector.broadcast %cst_35 : f32 to vector<1x128xf32>
    %64 = arith.divf %62, %63 : vector<1x128xf32>
    %65 = vector.broadcast %64 : vector<1x128xf32> to vector<16x128xf32>
    %66 = arith.subf %60, %65 : vector<16x128xf32>
    %67 = arith.mulf %66, %66 : vector<16x128xf32>
    %cst_36 = arith.constant dense<0.000000e+00> : vector<128xf32>
    %68 = vector.multi_reduction <add>, %67, %cst_36 [0] : vector<16x128xf32> to vector<128xf32>
    %69 = vector.shape_cast %68 : vector<128xf32> to vector<1x128xf32>
    %cst_37 = arith.constant 1.600000e+01 : f32
    %70 = vector.broadcast %cst_37 : f32 to vector<1x128xf32>
    %71 = arith.divf %69, %70 : vector<1x128xf32>
    %72 = vector.broadcast %64 : vector<1x128xf32> to vector<16x128xf32>
    %73 = arith.subf %60, %72 : vector<16x128xf32>
    %cst_38 = arith.constant 9.99999974E-6 : f32
    %74 = vector.broadcast %cst_38 : f32 to vector<1x128xf32>
    %75 = arith.addf %71, %74 : vector<1x128xf32>
    %76 = math.rsqrt %75 : vector<1x128xf32>
    %77 = vector.broadcast %76 : vector<1x128xf32> to vector<16x128xf32>
    %78 = arith.mulf %73, %77 : vector<16x128xf32>
    %79 = vector.extract_strided_slice %11 {offsets = [1, 0], sizes = [1, 128], strides = [1, 1]} : vector<2x256xf32> to vector<1x128xf32>
    %80 = vector.extract_strided_slice %11 {offsets = [1, 128], sizes = [1, 128], strides = [1, 1]} : vector<2x256xf32> to vector<1x128xf32>
    %81 = vector.broadcast %79 : vector<1x128xf32> to vector<16x128xf32>
    %82 = arith.mulf %81, %78 : vector<16x128xf32>
    %83 = vector.broadcast %80 : vector<1x128xf32> to vector<16x128xf32>
    %84 = arith.addf %82, %83 : vector<16x128xf32>
    %cst_39 = arith.constant 0.000000e+00 : f32
    %85 = vector.broadcast %cst_39 : f32 to vector<16x128xf32>
    %86 = arith.cmpf ogt, %84, %85 : vector<16x128xf32>
    %cst_40 = arith.constant 2.000000e-01 : f32
    %87 = vector.broadcast %cst_40 : f32 to vector<16x128xf32>
    %88 = arith.mulf %87, %84 : vector<16x128xf32>
    %89 = arith.select %86, %84, %88 : vector<16x128xi1>, vector<16x128xf32>
    %c0_41 = arith.constant 0 : index
    %c0_42 = arith.constant 0 : index
    %90 = vector.load %arg8[%c0_41, %c0_42] : memref<128x128xf32, #tpu.memory_space<vmem>>, vector<128x128xf32>
    %cst_43 = arith.constant dense<0.000000e+00> : vector<16x128xf32>
    %91 = tpu.matmul %89, %90, %cst_43 {dimension_numbers = #tpu.dot_dimension_numbers<[1], [0], [0], [1], [0, 0, 1, 1], [], []>} : vector<16x128xf32>, vector<128x128xf32>, vector<16x128xf32> -> vector<16x128xf32>
    %c0_44 = arith.constant 0 : index
    %c0_45 = arith.constant 0 : index
    %92 = vector.load %arg9[%c0_44, %c0_45] : memref<1x128xf32, #tpu.memory_space<vmem>>, vector<1x128xf32>
    %93 = vector.broadcast %92 : vector<1x128xf32> to vector<16x128xf32>
    %94 = arith.addf %91, %93 : vector<16x128xf32>
    %95 = math.tanh %94 : vector<16x128xf32>
    %c1_46 = arith.constant 1 : index
    %c0_47 = arith.constant 0 : index
    %c0_48 = arith.constant 0 : index
    %96 = vector.load %arg10[%c1_46, %c0_47, %c0_48] : memref<2x16x128xf32, #tpu.memory_space<vmem>>, vector<1x16x128xf32>
    %97 = vector.shape_cast %96 : vector<1x16x128xf32> to vector<16x128xf32>
    %98 = vector.shape_cast %95 : vector<16x128xf32> to vector<1x16x128xf32>
    tpu.vector_store %arg10[%c1_46, %c0_47, %c0_48], %98 {strides = array<i32>} : memref<2x16x128xf32, #tpu.memory_space<vmem>>, vector<1x16x128xf32>,
    return
  }
}

</mosaic_0001>

<bundles_post_ra>
// kernel: stynthesis_forward.1
= control target key start
LH: loop header
LB: loop body
LE: loop exit
PB: predicated region body
PF: predicated region fallthrough
CT: control target
= control target key end

     0   :  { %vm600_vm0 = vcmask 261120   ;;  %s2213_s1 = inlined_call_operand.vmem [shape: f32[1152,128], index: 1, kind: input, shape index: {}]   ;;  %s2214_s0 = inlined_call_operand.vmem [shape: f32[16,1152], index: 0, kind: input, shape index: {}]   ;;  %s2215_s6 = inlined_call_operand.vmem [shape: f32[32,256], index: 6, kind: input, shape index: {}]   ;;  %s2216_s4 = inlined_call_operand.vmem [shape: f32[2,32], index: 4, kind: input, shape index: {}]   ;;  %s2217_s8 = inlined_call_operand.vmem [shape: f32[128,128], index: 8, kind: input, shape index: {}]   ;;  %s2218_s2 = inlined_call_operand.vmem [shape: f32[1,128], index: 2, kind: input, shape index: {}]   ;;  %s2219_s3 = inlined_call_operand.vmem [shape: f32[2,16,128], index: 3, kind: input, shape index: {}]   ;;  %s2220_s5 = inlined_call_operand.vmem [shape: f32[1,128], index: 5, kind: input, shape index: {}]   ;;  %s2221_s7 = inlined_call_operand.vmem [shape: f32[1,256], index: 7, kind: input, shape index: {}]   ;;  %s2222_s9 = inlined_call_operand.vmem [shape: f32[1,128], index: 9, kind: input, shape index: {}]   ;;  %s2223_s10 = inlined_call_operand.vmem [shape: f32[2,16,128], index: 10, kind: output, shape index: {}]  }
   0x1   :  { %v69_v0 = vld [vmem:[%s2213_s1 + $0x80] sm:$0xff]  ;;  %v70_v1 = vld [vmem:[%s2213_s1 + $0x88] sm:$0xff]  ;;  %v71_v11 = vld [vmem:[%s2213_s1 + $0x90] sm:$0xff] }
   0x2   :  { %v53_v2 = vld [vmem:[%s2213_s1] sm:$0xff]  ;;  %v1309_v3 = vpack.c.bf16 %v70_v1, %v69_v0  ;;  %v54_v4 = vld [vmem:[%s2213_s1 + $0x8] sm:$0xff]  ;;  %v72_v13 = vld [vmem:[%s2213_s1 + $0x98] sm:$0xff] }
   0x3   :  { %v101_v5 = vld [vmem:[%s2213_s1 + $0x180] sm:$0xff]  ;;  %v102_v6 = vld [vmem:[%s2213_s1 + $0x188] sm:$0xff]  ;;  %v1311_v7 = vpack.c.bf16 %v54_v4, %v53_v2  ;;  %v55_v14 = vld [vmem:[%s2213_s1 + $0x10] sm:$0xff]  ;;  %v1313_v16 = vpack.c.bf16 %v72_v13, %v71_v11 }
   0x4   :  { %v1341_v8 = vpack.c.bf16 %v102_v6, %v101_v5  ;;  %v85_v9 = vld [vmem:[%s2213_s1 + $0x100] sm:$0xff]  ;;  %v86_v10 = vld [vmem:[%s2213_s1 + $0x108] sm:$0xff]  ;;  %1310 = vmatprep.subr.bf16.mxu0 %v1309_v3  ;;  %v56_v15 = vld [vmem:[%s2213_s1 + $0x18] sm:$0xff] }
   0x5   :  { %v1343_v12 = vpack.c.bf16 %v86_v10, %v85_v9  ;;  %1312 = vmatpush3.bf16.msra.mxu0 %v1311_v7  ;;  %v1315_v17 = vpack.c.bf16 %v56_v15, %v55_v14  ;;  %v103_v18 = vld [vmem:[%s2213_s1 + $0x190] sm:$0xff]  ;;  %v104_v19 = vld [vmem:[%s2213_s1 + $0x198] sm:$0xff]  ;;  %v73_v23 = vld [vmem:[%s2213_s1 + $0xa0] sm:$0xff] }
   0x6   :  { %1342 = vmatprep.subr.bf16.mxu1 %v1341_v8  ;;  %v87_v20 = vld [vmem:[%s2213_s1 + $0x110] sm:$0xff]  ;;  %v1345_v21 = vpack.c.bf16 %v104_v19, %v103_v18  ;;  %v88_v22 = vld [vmem:[%s2213_s1 + $0x118] sm:$0xff]  ;;  %v74_v24 = vld [vmem:[%s2213_s1 + $0xa8] sm:$0xff]  ;;  %1314 = vmatprep.subr.bf16.mxu0 %v1313_v16 }
   0x7   :  { %1344 = vmatpush3.bf16.msra.mxu1 %v1343_v12  ;;  %v1347_v25 = vpack.c.bf16 %v88_v22, %v87_v20  ;;  %v1317_v26 = vpack.c.bf16 %v74_v24, %v73_v23  ;;  %v57_v27 = vld [vmem:[%s2213_s1 + $0x20] sm:$0xff]  ;;  %v58_v28 = vld [vmem:[%s2213_s1 + $0x28] sm:$0xff]  ;;  %v75_v35 = vld [vmem:[%s2213_s1 + $0xb0] sm:$0xff] }
   0x8   :  { %v105_v29 = vld [vmem:[%s2213_s1 + $0x1a0] sm:$0xff]  ;;  %1346 = vmatprep.subr.bf16.mxu1 %v1345_v21  ;;  %v106_v30 = vld [vmem:[%s2213_s1 + $0x1a8] sm:$0xff]  ;;  %v1319_v33 = vpack.c.bf16 %v58_v28, %v57_v27  ;;  %v76_v36 = vld [vmem:[%s2213_s1 + $0xb8] sm:$0xff] }
   0x9   :  { %v89_v31 = vld [vmem:[%s2213_s1 + $0x120] sm:$0xff]  ;;  %v90_v32 = vld [vmem:[%s2213_s1 + $0x128] sm:$0xff]  ;;  %1316 = vmatpush3.bf16.msra.mxu0 %v1315_v17  ;;  %v1349_v34 = vpack.c.bf16 %v106_v30, %v105_v29  ;;  %v59_v37 = vld [vmem:[%s2213_s1 + $0x30] sm:$0xff]  ;;  %v1321_v39 = vpack.c.bf16 %v76_v36, %v75_v35 }
   0xa   :  { %1318 = vmatprep.subr.bf16.mxu0 %v1317_v26  ;;  %v1351_v38 = vpack.c.bf16 %v90_v32, %v89_v31  ;;  %v60_v40 = vld [vmem:[%s2213_s1 + $0x38] sm:$0xff]  ;;  %v107_v41 = vld [vmem:[%s2213_s1 + $0x1b0] sm:$0xff]  ;;  %v77_v46 = vld [vmem:[%s2213_s1 + $0xc0] sm:$0xff] }
   0xb   :  { %1348 = vmatpush3.bf16.msra.mxu1 %v1347_v25  ;;  %v108_v42 = vld [vmem:[%s2213_s1 + $0x1b8] sm:$0xff]  ;;  %v91_v44 = vld [vmem:[%s2213_s1 + $0x130] sm:$0xff]  ;;  %v78_v47 = vld [vmem:[%s2213_s1 + $0xc8] sm:$0xff]  ;;  %v1323_v48 = vpack.c.bf16 %v60_v40, %v59_v37 }
   0xc   :  { %1350 = vmatprep.subr.bf16.mxu1 %v1349_v34  ;;  %v1353_v43 = vpack.c.bf16 %v108_v42, %v107_v41  ;;  %v92_v45 = vld [vmem:[%s2213_s1 + $0x138] sm:$0xff]  ;;  %v109_v49 = vld [vmem:[%s2213_s1 + $0x1c0] sm:$0xff]  ;;  %v110_v50 = vld [vmem:[%s2213_s1 + $0x1c8] sm:$0xff]  ;;  %v1325_v52 = vpack.c.bf16 %v78_v47, %v77_v46 }
   0xd   :  { %1320 = vmatpush3.bf16.msra.mxu0 %v1319_v33  ;;  %v1355_v51 = vpack.c.bf16 %v92_v45, %v91_v44  ;;  %v61_v53 = vld [vmem:[%s2213_s1 + $0x40] sm:$0xff]  ;;  %v62_v54 = vld [vmem:[%s2213_s1 + $0x48] sm:$0xff]  ;;  %v1357_v56 = vpack.c.bf16 %v110_v50, %v109_v49  ;;  %v79_v58 = vld [vmem:[%s2213_s1 + $0xd0] sm:$0xff] }
   0xe   :  { %1322 = vmatprep.subr.bf16.mxu0 %v1321_v39  ;;  %v93_v55 = vld [vmem:[%s2213_s1 + $0x140] sm:$0xff]  ;;  %v94_v57 = vld [vmem:[%s2213_s1 + $0x148] sm:$0xff]  ;;  %v80_v59 = vld [vmem:[%s2213_s1 + $0xd8] sm:$0xff]  ;;  %v1327_v62 = vpack.c.bf16 %v62_v54, %v61_v53 }
   0xf   :  { %1352 = vmatpush3.bf16.msra.mxu1 %v1351_v38  ;;  %v111_v60 = vld [vmem:[%s2213_s1 + $0x1d0] sm:$0xff]  ;;  %v112_v61 = vld [vmem:[%s2213_s1 + $0x1d8] sm:$0xff]  ;;  %v1359_v63 = vpack.c.bf16 %v94_v57, %v93_v55  ;;  %v1329_v0 = vpack.c.bf16 %v80_v59, %v79_v58  ;;  %v81_v6 = vld [vmem:[%s2213_s1 + $0xe0] sm:$0xff] }
  0x10   :  { %1354 = vmatprep.subr.bf16.mxu1 %v1353_v43  ;;  %v63_v1 = vld [vmem:[%s2213_s1 + $0x50] sm:$0xff]  ;;  %v64_v2 = vld [vmem:[%s2213_s1 + $0x58] sm:$0xff]  ;;  %v1361_v4 = vpack.c.bf16 %v112_v61, %v111_v60  ;;  %v82_v7 = vld [vmem:[%s2213_s1 + $0xe8] sm:$0xff] }
  0x11   :  { %1324 = vmatpush3.bf16.msra.mxu0 %v1323_v48  ;;  %v95_v3 = vld [vmem:[%s2213_s1 + $0x150] sm:$0xff]  ;;  %v96_v5 = vld [vmem:[%s2213_s1 + $0x158] sm:$0xff]  ;;  %v113_v8 = vld [vmem:[%s2213_s1 + $0x1e0] sm:$0xff]  ;;  %v1331_v10 = vpack.c.bf16 %v64_v2, %v63_v1  ;;  %v1333_v14 = vpack.c.bf16 %v82_v7, %v81_v6 }
  0x12   :  { %1326 = vmatprep.subr.bf16.mxu0 %v1325_v52  ;;  %v114_v9 = vld [vmem:[%s2213_s1 + $0x1e8] sm:$0xff]  ;;  %v65_v11 = vld [vmem:[%s2213_s1 + $0x60] sm:$0xff]  ;;  %v1363_v13 = vpack.c.bf16 %v96_v5, %v95_v3  ;;  %v83_v19 = vld [vmem:[%s2213_s1 + $0xf0] sm:$0xff] }
  0x13   :  { %1356 = vmatpush3.bf16.msra.mxu1 %v1355_v51  ;;  %v36_v12 = vld [vmem:[%s2214_s0 + $0x8] sm:$0xff]  ;;  %v97_v16 = vld [vmem:[%s2213_s1 + $0x160] sm:$0xff]  ;;  %v1365_v18 = vpack.c.bf16 %v114_v9, %v113_v8  ;;  %v84_v20 = vld [vmem:[%s2213_s1 + $0xf8] sm:$0xff] }
  0x14   :  { %1358 = vmatprep.subr.bf16.mxu1 %v1357_v56  ;;  %v66_v15 = vld [vmem:[%s2213_s1 + $0x68] sm:$0xff]  ;;  %268 = vmatprep.mubr.f32.mxu0 %v36_v12  ;;  %v38_v21 = vld [vmem:[%s2214_s0 + $0x18] sm:$0xff]  ;;  %v115_v22 = vld [vmem:[%s2213_s1 + $0x1f0] sm:$0xff]  ;;  %v1337_v26 = vpack.c.bf16 %v84_v20, %v83_v19 }
  0x15   :  { %1328 = vmatpush3.bf16.msra.mxu0 %v1327_v62  ;;  %v98_v17 = vld [vmem:[%s2213_s1 + $0x168] sm:$0xff]  ;;  %v116_v23 = vld [vmem:[%s2213_s1 + $0x1f8] sm:$0xff]  ;;  %343 = vmatprep.mubr.f32.mxu1 %v38_v21  ;;  %v1335_v24 = vpack.c.bf16 %v66_v15, %v65_v11  ;;  %v67_v27 = vld [vmem:[%s2213_s1 + $0x70] sm:$0xff] }
  0x16   :  { %1330 = vmatprep.subr.bf16.mxu0 %v1329_v0  ;;  %v1367_v25 = vpack.c.bf16 %v98_v17, %v97_v16  ;;  %v68_v28 = vld [vmem:[%s2213_s1 + $0x78] sm:$0xff]  ;;  %v99_v29 = vld [vmem:[%s2213_s1 + $0x170] sm:$0xff]  ;;  %v1369_v30 = vpack.c.bf16 %v116_v23, %v115_v22  ;;  %v133_v32 = vld [vmem:[%s2213_s1 + $0x280] sm:$0xff] }
  0x17   :  { %1360 = vmatpush3.bf16.msra.mxu1 %v1359_v63  ;;  %v100_v31 = vld [vmem:[%s2213_s1 + $0x178] sm:$0xff]  ;;  %v134_v33 = vld [vmem:[%s2213_s1 + $0x288] sm:$0xff]  ;;  %v165_v34 = vld [vmem:[%s2213_s1 + $0x380] sm:$0xff]  ;;  %v1339_v36 = vpack.c.bf16 %v68_v28, %v67_v27 }
  0x18   :  { %1362 = vmatprep.subr.bf16.mxu1 %v1361_v4  ;;  %v166_v35 = vld [vmem:[%s2213_s1 + $0x388] sm:$0xff]  ;;  %v1371_v37 = vpack.c.bf16 %v100_v31, %v99_v29  ;;  %v1373_v38 = vpack.c.bf16 %v134_v33, %v133_v32  ;;  %v117_v39 = vld [vmem:[%s2213_s1 + $0x200] sm:$0xff]  ;;  %v135_v44 = vld [vmem:[%s2213_s1 + $0x290] sm:$0xff] }
  0x19   :  { %1332 = vmatpush3.bf16.msra.mxu0 %v1331_v10  ;;  %v118_v40 = vld [vmem:[%s2213_s1 + $0x208] sm:$0xff]  ;;  %v149_v41 = vld [vmem:[%s2213_s1 + $0x300] sm:$0xff]  ;;  %v1405_v42 = vpack.c.bf16 %v166_v35, %v165_v34  ;;  %v136_v45 = vld [vmem:[%s2213_s1 + $0x298] sm:$0xff] }
  0x1a   :  { %1334 = vmatprep.subr.bf16.mxu0 %v1333_v14  ;;  %v150_v43 = vld [vmem:[%s2213_s1 + $0x308] sm:$0xff]  ;;  %v167_v46 = vld [vmem:[%s2213_s1 + $0x390] sm:$0xff]  ;;  %v168_v47 = vld [vmem:[%s2213_s1 + $0x398] sm:$0xff]  ;;  %v1375_v49 = vpack.c.bf16 %v118_v40, %v117_v39  ;;  %v1377_v52 = vpack.c.bf16 %v136_v45, %v135_v44 }
  0x1b   :  { %1364 = vmatpush3.bf16.msra.mxu1 %v1363_v13  ;;  %v35_v48 = vld [vmem:[%s2214_s0] sm:$0xff]  ;;  %v37_v50 = vld [vmem:[%s2214_s0 + $0x10] sm:$0xff]  ;;  %v1407_v51 = vpack.c.bf16 %v150_v43, %v149_v41  ;;  %v120_v54 = vld [vmem:[%s2213_s1 + $0x218] sm:$0xff]  ;;  %v1409_v56 = vpack.c.bf16 %v168_v47, %v167_v46 }
  0x1c   :  { %1366 = vmatprep.subr.bf16.mxu1 %v1365_v18  ;;  %v119_v53 = vld [vmem:[%s2213_s1 + $0x210] sm:$0xff]  ;;  %v152_v57 = vld [vmem:[%s2213_s1 + $0x318] sm:$0xff]  ;;  %v137_v58 = vld [vmem:[%s2213_s1 + $0x2a0] sm:$0xff] }
  0x1d   :  { %1336 = vmatpush3.bf16.msra.mxu0 %v1335_v24  ;;  %v151_v55 = vld [vmem:[%s2213_s1 + $0x310] sm:$0xff]  ;;  %v138_v59 = vld [vmem:[%s2213_s1 + $0x2a8] sm:$0xff]  ;;  %v169_v60 = vld [vmem:[%s2213_s1 + $0x3a0] sm:$0xff]  ;;  %v1379_v62 = vpack.c.bf16 %v120_v54, %v119_v53 }
  0x1e   :  { %1338 = vmatprep.subr.bf16.mxu0 %v1337_v26  ;;  %v170_v61 = vld [vmem:[%s2213_s1 + $0x3a8] sm:$0xff]  ;;  %v1411_v63 = vpack.c.bf16 %v152_v57, %v151_v55  ;;  %v1381_v0 = vpack.c.bf16 %v138_v59, %v137_v58  ;;  %v121_v1 = vld [vmem:[%s2213_s1 + $0x220] sm:$0xff]  ;;  %v139_v6 = vld [vmem:[%s2213_s1 + $0x2b0] sm:$0xff] }
  0x1f   :  { %1368 = vmatpush3.bf16.msra.mxu1 %v1367_v25  ;;  %v122_v2 = vld [vmem:[%s2213_s1 + $0x228] sm:$0xff]  ;;  %v153_v3 = vld [vmem:[%s2213_s1 + $0x320] sm:$0xff]  ;;  %v1413_v4 = vpack.c.bf16 %v170_v61, %v169_v60  ;;  %v140_v7 = vld [vmem:[%s2213_s1 + $0x2b8] sm:$0xff] }
  0x20   :  { %1370 = vmatprep.subr.bf16.mxu1 %v1369_v30  ;;  %v154_v5 = vld [vmem:[%s2213_s1 + $0x328] sm:$0xff]  ;;  %v171_v8 = vld [vmem:[%s2213_s1 + $0x3b0] sm:$0xff]  ;;  %v172_v9 = vld [vmem:[%s2213_s1 + $0x3b8] sm:$0xff]  ;;  %v1383_v10 = vpack.c.bf16 %v122_v2, %v121_v1  ;;  %v1385_v15 = vpack.c.bf16 %v140_v7, %v139_v6 }
  0x21   :  { %1340 = vmatpush3.bf16.msra.mxu0 %v1339_v36  ;;  %v123_v11 = vld [vmem:[%s2213_s1 + $0x230] sm:$0xff]  ;;  %v124_v12 = vld [vmem:[%s2213_s1 + $0x238] sm:$0xff]  ;;  %v1415_v14 = vpack.c.bf16 %v154_v5, %v153_v3  ;;  %v44_v18 = vld [vmem:[%s2214_s0 + $0x48] sm:$0xff]  ;;  %v1417_v19 = vpack.c.bf16 %v172_v9, %v171_v8 }
  0x22   :  { %1374 = vmatprep.subr.bf16.mxu0 %v1373_v38  ;;  %v45_v13 = vld [vmem:[%s2214_s0 + $0x50] sm:$0xff]  ;;  %v156_v17 = vld [vmem:[%s2213_s1 + $0x338] sm:$0xff]  ;;  %v141_v20 = vld [vmem:[%s2213_s1 + $0x2c0] sm:$0xff]  ;;  %v1387_v26 = vpack.c.bf16 %v124_v12, %v123_v11 }
  0x23   :  { %1372 = vmatpush3.bf16.msra.mxu1 %v1371_v37  ;;  %v155_v16 = vld [vmem:[%s2213_s1 + $0x330] sm:$0xff]  ;;  %v142_v21 = vld [vmem:[%s2213_s1 + $0x2c8] sm:$0xff]  ;;  %v47_v22 = vld [vmem:[%s2214_s0 + $0x60] sm:$0xff] }
  0x24   :  { %1406 = vmatprep.subr.bf16.mxu1 %v1405_v42  ;;  %269 = vmatmul.mubr.f32.vlgmr.msra.gmra.mrb[0].mxu0 %v35_v48  ;;  %v173_v23 = vld [vmem:[%s2213_s1 + $0x3c0] sm:$0xff]  ;;  %v174_v24 = vld [vmem:[%s2213_s1 + $0x3c8] sm:$0xff]  ;;  %v46_v25 = vld [vmem:[%s2214_s0 + $0x58] sm:$0xff]  ;;  %v1419_v29 = vpack.c.bf16 %v156_v17, %v155_v16  ;;  %v1389_v30 = vpack.c.bf16 %v142_v21, %v141_v20 }
  0x25   :  { %1376 = vmatpush3.bf16.msra.mxu0 %v1375_v49  ;;  %273 = vmatprep.mubr.f32.mxu0 %v45_v13  ;;  %v125_v27 = vld [vmem:[%s2213_s1 + $0x240] sm:$0xff]  ;;  %v40_v28 = vld [vmem:[%s2214_s0 + $0x28] sm:$0xff]  ;;  %v1421_v34 = vpack.c.bf16 %v174_v24, %v173_v23  ;;  %v143_v35 = vld [vmem:[%s2213_s1 + $0x2d0] sm:$0xff] }
  0x26   :  { %344 = vmatmul.mubr.f32.vlgmr.msra.gmra.mrb[0].mxu1 %v37_v50  ;;  %1378 = vmatprep.subr.bf16.mxu0 %v1377_v52  ;;  %v126_v31 = vld [vmem:[%s2213_s1 + $0x248] sm:$0xff]  ;;  %v157_v32 = vld [vmem:[%s2213_s1 + $0x340] sm:$0xff]  ;;  %v144_v36 = vld [vmem:[%s2213_s1 + $0x2d8] sm:$0xff] }
  0x27   :  { %1408 = vmatpush3.bf16.msra.mxu1 %v1407_v51  ;;  %348 = vmatprep.mubr.f32.mxu1 %v47_v22  ;;  %v158_v33 = vld [vmem:[%s2213_s1 + $0x348] sm:$0xff]  ;;  %v42_v37 = vld [vmem:[%s2214_s0 + $0x38] sm:$0xff]  ;;  %v175_v38 = vld [vmem:[%s2213_s1 + $0x3d0] sm:$0xff]  ;;  %v1391_v40 = vpack.c.bf16 %v126_v31, %v125_v27  ;;  %v1393_v42 = vpack.c.bf16 %v144_v36, %v143_v35 }
  0x28   :  { %1410 = vmatprep.subr.bf16.mxu1 %v1409_v56  ;;  %274 = vmatmul.mubr.f32.gmra.mrb[2].mxu0 %v44_v18  ;;  %v176_v39 = vld [vmem:[%s2213_s1 + $0x3d8] sm:$0xff]  ;;  %v1423_v41 = vpack.c.bf16 %v158_v33, %v157_v32  ;;  %v127_v43 = vld [vmem:[%s2213_s1 + $0x250] sm:$0xff]  ;;  %v145_v48 = vld [vmem:[%s2213_s1 + $0x2e0] sm:$0xff] }
  0x29   :  { %1380 = vmatpush3.bf16.msra.mxu0 %v1379_v62  ;;  %418 = vmatprep.mubr.f32.mxu0 %v40_v28  ;;  %v128_v44 = vld [vmem:[%s2213_s1 + $0x258] sm:$0xff]  ;;  %v159_v45 = vld [vmem:[%s2213_s1 + $0x350] sm:$0xff]  ;;  %v1425_v46 = vpack.c.bf16 %v176_v39, %v175_v38  ;;  %v146_v49 = vld [vmem:[%s2213_s1 + $0x2e8] sm:$0xff] }
  0x2a   :  { %1382 = vmatprep.subr.bf16.mxu0 %v1381_v0  ;;  %349 = vmatmul.mubr.f32.gmra.mrb[2].mxu1 %v46_v25  ;;  %v160_v47 = vld [vmem:[%s2213_s1 + $0x358] sm:$0xff]  ;;  %v177_v50 = vld [vmem:[%s2213_s1 + $0x3e0] sm:$0xff]  ;;  %v178_v51 = vld [vmem:[%s2213_s1 + $0x3e8] sm:$0xff]  ;;  %v1395_v52 = vpack.c.bf16 %v128_v44, %v127_v43  ;;  %v1397_v54 = vpack.c.bf16 %v146_v49, %v145_v48  ;;  %v1554_v43 = vmov 0.0  }
  0x2b   :  { %1412 = vmatpush3.bf16.msra.mxu1 %v1411_v63  ;;  %493 = vmatprep.mubr.f32.mxu1 %v42_v37  ;;  %v1427_v53 = vpack.c.bf16 %v160_v47, %v159_v45  ;;  %v129_v55 = vld [vmem:[%s2213_s1 + $0x260] sm:$0xff]  ;;  %v130_v56 = vld [vmem:[%s2213_s1 + $0x268] sm:$0xff]  ;;  %v1429_v58 = vpack.c.bf16 %v178_v51, %v177_v50  ;;  %v147_v60 = vld [vmem:[%s2213_s1 + $0x2f0] sm:$0xff] }
  0x2c   :  { %1414 = vmatprep.subr.bf16.mxu1 %v1413_v4  ;;  %v161_v57 = vld [vmem:[%s2213_s1 + $0x360] sm:$0xff]  ;;  %v162_v59 = vld [vmem:[%s2213_s1 + $0x368] sm:$0xff]  ;;  %v148_v61 = vld [vmem:[%s2213_s1 + $0x2f8] sm:$0xff]  ;;  %v1399_v0 = vpack.c.bf16 %v130_v56, %v129_v55 }
  0x2d   :  { %1384 = vmatpush3.bf16.msra.mxu0 %v1383_v10  ;;  %v179_v62 = vld [vmem:[%s2213_s1 + $0x3f0] sm:$0xff]  ;;  %v180_v63 = vld [vmem:[%s2213_s1 + $0x3f8] sm:$0xff]  ;;  %v1431_v1 = vpack.c.bf16 %v162_v59, %v161_v57  ;;  %v1401_v2 = vpack.c.bf16 %v148_v61, %v147_v60  ;;  %v181_v8 = vld [vmem:[%s2213_s1 + $0x400] sm:$0xff] }
  0x2e   :  { %1386 = vmatprep.subr.bf16.mxu0 %v1385_v15  ;;  %v131_v3 = vld [vmem:[%s2213_s1 + $0x270] sm:$0xff]  ;;  %v132_v4 = vld [vmem:[%s2213_s1 + $0x278] sm:$0xff]  ;;  %v1433_v6 = vpack.c.bf16 %v180_v63, %v179_v62  ;;  %v182_v9 = vld [vmem:[%s2213_s1 + $0x408] sm:$0xff] }
  0x2f   :  { %1416 = vmatpush3.bf16.msra.mxu1 %v1415_v14  ;;  %v163_v5 = vld [vmem:[%s2213_s1 + $0x370] sm:$0xff]  ;;  %v164_v7 = vld [vmem:[%s2213_s1 + $0x378] sm:$0xff]  ;;  %v581_v10 = vld [vmem:[%s2215_s6 + $0x8] sm:$0xff]  ;;  %v1403_v12 = vpack.c.bf16 %v132_v4, %v131_v3  ;;  %v1437_v14 = vpack.c.bf16 %v182_v9, %v181_v8 }
  0x30   :  { %1418 = vmatprep.subr.bf16.mxu1 %v1417_v19  ;;  %v583_v11 = vld [vmem:[%s2215_s6 + $0x18] sm:$0xff]  ;;  %v1435_v13 = vpack.c.bf16 %v164_v7, %v163_v5  ;;  %v183_v15 = vld [vmem:[%s2213_s1 + $0x410] sm:$0xff]  ;;  %v580_v18 = vld [vmem:[%s2215_s6] sm:$0xff] }
  0x31   :  { %1388 = vmatpush3.bf16.msra.mxu0 %v1387_v26  ;;  %v184_v16 = vld [vmem:[%s2213_s1 + $0x418] sm:$0xff]  ;;  %v1469_v17 = vpack.c.bf16 %v583_v11, %v581_v10  ;;  %v582_v19 = vld [vmem:[%s2215_s6 + $0x10] sm:$0xff]  ;;  %v39_v20 = vld [vmem:[%s2214_s0 + $0x20] sm:$0xff] }
  0x32   :  { %1390 = vmatprep.subr.bf16.mxu0 %v1389_v30  ;;  %v585_v21 = vld [vmem:[%s2215_s6 + $0x28] sm:$0xff]  ;;  %v587_v22 = vld [vmem:[%s2215_s6 + $0x38] sm:$0xff]  ;;  %v41_v23 = vld [vmem:[%s2214_s0 + $0x30] sm:$0xff]  ;;  %v1441_v24 = vpack.c.bf16 %v184_v16, %v183_v15  ;;  %v1471_v28 = vpack.c.bf16 %v582_v19, %v580_v18 }
  0x33   :  { %1420 = vmatpush3.bf16.msra.mxu1 %v1419_v29  ;;  %v49_v25 = vld [vmem:[%s2214_s0 + $0x70] sm:$0xff]  ;;  %v185_v26 = vld [vmem:[%s2213_s1 + $0x420] sm:$0xff]  ;;  %v186_v27 = vld [vmem:[%s2213_s1 + $0x428] sm:$0xff]  ;;  %v1473_v30 = vpack.c.bf16 %v587_v22, %v585_v21 }
  0x34   :  { %1422 = vmatprep.subr.bf16.mxu1 %v1421_v34  ;;  %v51_v29 = vld [vmem:[%s2214_s0 + $0x80] sm:$0xff]  ;;  %v586_v32 = vld [vmem:[%s2215_s6 + $0x30] sm:$0xff]  ;;  %v48_v33 = vld [vmem:[%s2214_s0 + $0x68] sm:$0xff]  ;;  %v1445_v35 = vpack.c.bf16 %v186_v27, %v185_v26 }
  0x35   :  { %1392 = vmatpush3.bf16.msra.mxu0 %v1391_v40  ;;  %v584_v31 = vld [vmem:[%s2215_s6 + $0x20] sm:$0xff]  ;;  %v50_v34 = vld [vmem:[%s2214_s0 + $0x78] sm:$0xff]  ;;  %v187_v36 = vld [vmem:[%s2213_s1 + $0x430] sm:$0xff] }
  0x36   :  { %1394 = vmatprep.subr.bf16.mxu0 %v1393_v42  ;;  %v188_v37 = vld [vmem:[%s2213_s1 + $0x438] sm:$0xff]  ;;  %v43_v38 = vld [vmem:[%s2214_s0 + $0x40] sm:$0xff]  ;;  %v1475_v39 = vpack.c.bf16 %v586_v32, %v584_v31  ;;  %v190_v42 = vld [vmem:[%s2213_s1 + $0x448] sm:$0xff] }
  0x37   :  { %1424 = vmatpush3.bf16.msra.mxu1 %v1423_v41  ;;  %v1449_v40 = vpack.c.bf16 %v188_v37, %v187_v36  ;;  %v189_v41 = vld [vmem:[%s2213_s1 + $0x440] sm:$0xff]  ;;  %v192_v47 = vld [vmem:[%s2213_s1 + $0x458] sm:$0xff]  ;;  %v194_v50 = vld [vmem:[%s2213_s1 + $0x468] sm:$0xff] }
  0x38   :  { %1426 = vmatprep.subr.bf16.mxu1 %v1425_v46  ;;  %v579_v44 = vld [vmem:[%s2216_s4] sm:$0x3]  ;;  %v1453_v45 = vpack.c.bf16 %v190_v42, %v189_v41  ;;  %v191_v46 = vld [vmem:[%s2213_s1 + $0x450] sm:$0xff]  ;;  %v52_v55 = vld [vmem:[%s2214_s0 + $0x88] sm:$0xff] }
  0x39   :  { %1396 = vmatpush3.bf16.msra.mxu0 %v1395_v52  ;;  %v1457_v48 = vpack.c.bf16 %v192_v47, %v191_v46  ;;  %v193_v49 = vld [vmem:[%s2213_s1 + $0x460] sm:$0xff]  ;;  %v195_v52 = vld [vmem:[%s2213_s1 + $0x470] sm:$0xff]  ;;  %v732_v57 = vld [vmem:[%s2217_s8 + $0x8] sm:$0xff] }
  0x3a   :  { %1398 = vmatprep.subr.bf16.mxu0 %v1397_v54  ;;  %v1461_v51 = vpack.c.bf16 %v194_v50, %v193_v49  ;;  %v731_v56 = vld [vmem:[%s2217_s8] sm:$0xff]  ;;  %v733_v59 = vld [vmem:[%s2217_s8 + $0x10] sm:$0xff]  ;;  %v734_v60 = vld [vmem:[%s2217_s8 + $0x18] sm:$0xff] }
  0x3b   :  { %1428 = vmatpush3.bf16.msra.mxu1 %v1427_v53  ;;  %v196_v53 = vld [vmem:[%s2213_s1 + $0x478] sm:$0xff]  ;;  %v1481_v61 = vpack.c.bf16 %v734_v60, %v733_v59  ;;  %v735_v62 = vld [vmem:[%s2217_s8 + $0x20] sm:$0xff]  ;;  %v736_v63 = vld [vmem:[%s2217_s8 + $0x28] sm:$0xff] }
  0x3c   :  { %1430 = vmatprep.subr.bf16.mxu1 %v1429_v58  ;;  %v1465_v54 = vpack.c.bf16 %v196_v53, %v195_v52  ;;  %v1477_v58 = vpack.c.bf16 %v732_v57, %v731_v56  ;;  %v739_v4 = vld [vmem:[%s2217_s8 + $0x40] sm:$0xff]  ;;  %v740_v5 = vld [vmem:[%s2217_s8 + $0x48] sm:$0xff]  ;;  %v741_v7 = vld [vmem:[%s2217_s8 + $0x50] sm:$0xff] }
  0x3d   :  { %1400 = vmatpush3.bf16.msra.mxu0 %v1399_v0  ;;  %v1485_v0 = vpack.c.bf16 %v736_v63, %v735_v62  ;;  %v742_v8 = vld [vmem:[%s2217_s8 + $0x58] sm:$0xff]  ;;  %v743_v10 = vld [vmem:[%s2217_s8 + $0x60] sm:$0xff]  ;;  %v744_v11 = vld [vmem:[%s2217_s8 + $0x68] sm:$0xff] }
  0x3e   :  { %1402 = vmatprep.subr.bf16.mxu0 %v1401_v2  ;;  %v738_v2 = vld [vmem:[%s2217_s8 + $0x38] sm:$0xff]  ;;  %v1497_v9 = vpack.c.bf16 %v742_v8, %v741_v7  ;;  %v677_v52 = vld [vmem:[%s2219_s3 + $0x8] sm:$0xff] }
  0x3f   :  { %1432 = vmatpush3.bf16.msra.mxu1 %v1431_v1  ;;  %v737_v1 = vld [vmem:[%s2217_s8 + $0x30] sm:$0xff]  ;;  %v994_v53 = vld [vmem:[%s2219_s3 + $0x18] sm:$0xff] }
  0x40   :  { %1434 = vmatprep.subr.bf16.mxu1 %v1433_v6  ;;  %v1489_v3 = vpack.c.bf16 %v738_v2, %v737_v1  ;;  %v1493_v6 = vpack.c.bf16 %v740_v5, %v739_v4 }
  0x41   :  { %1404 = vmatpush3.bf16.msra.mxu0 %v1403_v12  ;;  %v1501_v12 = vpack.c.bf16 %v744_v11, %v743_v10 }
  0x42   :  { %1438 = vmatprep.subr.bf16.mxu0 %v1437_v14 }
  0x43   :  { %1436 = vmatpush3.bf16.msra.mxu1 %v1435_v13  ;;  %v745_v13 = vld [vmem:[%s2217_s8 + $0x70] sm:$0xff] }
  0x44   :  { %1470 = vmatprep.subr.bf16.mxu1 %v1469_v17  ;;  %419 = vmatmul.mubr.f32.vlgmr.msra.gmra.mrb[4].mxu0 %v39_v20  ;;  %v989_v17 = vld [vmem:[%s2218_s2] ss:$0 sm:$0xff] }
  0x45   :  { %1440 = vmatpush3.bf16.msra.mxu0 %v1437_v14  ;;  %423 = vmatprep.mubr.f32.mxu0 %v49_v25  ;;  %v746_v14 = vld [vmem:[%s2217_s8 + $0x78] sm:$0xff] }
  0x46   :  { %494 = vmatmul.mubr.f32.vlgmr.msra.gmra.mrb[4].mxu1 %v41_v23  ;;  %1442 = vmatprep.subr.bf16.mxu0 %v1441_v24  ;;  %v1505_v15 = vpack.c.bf16 %v746_v14, %v745_v13 }
  0x47   :  { %498 = vmatprep.mubr.f32.mxu1 %v51_v29  ;;  %1472 = vmatpush1.bf16.msra.mxu1 %v1471_v28 }
  0x48   :  { %424 = vmatmul.mubr.f32.gmra.mrb[6].mxu0 %v48_v33  ;;  %1474 = vmatprep.subr.bf16.mxu1 %v1473_v30 }
  0x49   :  { %1444 = vmatpush3.bf16.msra.mxu0 %v1441_v24  ;;  %1236 = vmatprep.mubr.f32.mxu0 %v43_v38 }
  0x4a   :  { %499 = vmatmul.mubr.f32.gmra.mrb[6].mxu1 %v50_v34  ;;  %1446 = vmatprep.subr.bf16.mxu0 %v1445_v35 }
  0x4b   :  { %1476 = vmatpush1.bf16.msra.mxu1 %v1475_v39  ;;  %668 = vmatprep.mubr.f32.mxu1 %v1554_v43 }
  0x4c   :  { %1478 = vmatprep.subr.bf16.mxu1 %v1477_v58 }
  0x4d   :  { %1448 = vmatpush3.bf16.msra.mxu0 %v1445_v35 }
  0x4e   :  { %1450 = vmatprep.subr.bf16.mxu0 %v1449_v40  ;;  %990 = vmatmul.mubr.msk.f32.vlgmr.msra.gmra.mrb[8].mxu1 %vm600_vm0, %v579_v44 }
  0x4f   :  { %1480 = vmatpush3.bf16.msra.mxu1 %v1477_v58 }
  0x50   :  { %1482 = vmatprep.subr.bf16.mxu1 %v1481_v61 }
  0x51   :  { %1452 = vmatpush3.bf16.msra.mxu0 %v1449_v40 }
  0x52   :  { %1454 = vmatprep.subr.bf16.mxu0 %v1453_v45 }
  0x53   :  { %1484 = vmatpush3.bf16.msra.mxu1 %v1481_v61 }
  0x54   :  { %1486 = vmatprep.subr.bf16.mxu1 %v1485_v0 }
  0x55   :  { %1456 = vmatpush3.bf16.msra.mxu0 %v1453_v45 }
  0x56   :  { %1458 = vmatprep.subr.bf16.mxu0 %v1457_v48 }
  0x57   :  { %1488 = vmatpush3.bf16.msra.mxu1 %v1485_v0 }
  0x58   :  { %1490 = vmatprep.subr.bf16.mxu1 %v1489_v3 }
  0x59   :  { %1460 = vmatpush3.bf16.msra.mxu0 %v1457_v48 }
  0x5a   :  { %1462 = vmatprep.subr.bf16.mxu0 %v1461_v51 }
  0x5b   :  { %1492 = vmatpush3.bf16.msra.mxu1 %v1489_v3 }
  0x5c   :  { %1494 = vmatprep.subr.bf16.mxu1 %v1493_v6 }
  0x5d   :  { %1464 = vmatpush3.bf16.msra.mxu0 %v1461_v51  ;;  %v991_v51 = vld [vmem:[%s2220_s5] ss:$0 sm:$0xff] }
  0x5e   :  { %1466 = vmatprep.subr.bf16.mxu0 %v1465_v54  ;;  %v685_v56 = vmul.f32 %v991_v51, %v677_v52  ;;  %v837_v57 = vmul.f32 %v994_v53, %v991_v51 }
  0x5f   :  { %1496 = vmatpush3.bf16.msra.mxu1 %v1493_v6 }
  0x60   :  { %1498 = vmatprep.subr.bf16.mxu1 %v1497_v9 }
  0x61   :  { %1468 = vmatpush3.bf16.msra.mxu0 %v1465_v54  ;;  %v676_v54 = vld [vmem:[%s2219_s3] sm:$0xff] }
  0x62   :  { %1510 = vmatprep.subr.bf16.mxu0 %v1477_v58  ;;  %v684_v59 = vmul.f32 %v991_v51, %v676_v54 }
  0x63   :  { %1500 = vmatpush3.bf16.msra.mxu1 %v1497_v9 }
  0x64   :  { %1237 = vmatmul.mubr.f32.vlgmr.msra.gmra.mrb[8].mxu0 %v52_v55  ;;  %1502 = vmatprep.subr.bf16.mxu1 %v1501_v12  ;;  %v993_v55 = vld [vmem:[%s2219_s3 + $0x10] sm:$0xff] }
  0x65   :  { %1512 = vmatpush3.bf16.msra.mxu0 %v1477_v58  ;;  %v836_v60 = vmul.f32 %v993_v55, %v991_v51  ;;  %v588_v51 = vld [vmem:[%s2221_s7] sm:$0x3] }
  0x66   :  { %1514 = vmatprep.subr.bf16.mxu0 %v1481_v61 }
  0x67   :  { %1504 = vmatpush3.bf16.msra.mxu1 %v1501_v12 }
  0x68   :  { %1506 = vmatprep.subr.bf16.mxu1 %v1505_v15 }
  0x69   :  { %1516 = vmatpush3.bf16.msra.mxu0 %v1481_v61 }
  0x6a   :  { %1518 = vmatprep.subr.bf16.mxu0 %v1485_v0 }
  0x6b   :  { %1508 = vmatpush3.bf16.msra.mxu1 %v1505_v15 }
  0x6d   :  { %1520 = vmatpush3.bf16.msra.mxu0 %v1485_v0 }
  0x6e   :  { %1522 = vmatprep.subr.bf16.mxu0 %v1489_v3 }
  0x71   :  { %1524 = vmatpush3.bf16.msra.mxu0 %v1489_v3 }
  0x72   :  { %1526 = vmatprep.subr.bf16.mxu0 %v1493_v6 }
  0x75   :  { %1528 = vmatpush3.bf16.msra.mxu0 %v1493_v6 }
  0x76   :  { %1530 = vmatprep.subr.bf16.mxu0 %v1497_v9 }
  0x79   :  { %1532 = vmatpush3.bf16.msra.mxu0 %v1497_v9 }
  0x7a   :  { %1534 = vmatprep.subr.bf16.mxu0 %v1501_v12 }
  0x7d   :  { %1536 = vmatpush3.bf16.msra.mxu0 %v1501_v12 }
  0x7e   :  { %1538 = vmatprep.subr.bf16.mxu0 %v1505_v15 }
  0x81   :  { %1540 = vmatpush3.bf16.msra.mxu0 %v1505_v15 }
  0xf7   :  { %v1030_v16 = vpop.f32.mrb[0].mxu0 }
  0xf8   :  { %v1031_v18 = vpop.f32.mrb[1].mxu0 }
  0xf9   :  { %v1068_v19 = vpop.f32.mrb[0].mxu1  ;;  %v1032_v20 = vadd.f32 %v1031_v18, %v1030_v16 }
  0xfa   :  { %v1069_v21 = vpop.f32.mrb[1].mxu1 }
  0xfb   :  { %v1070_v22 = vadd.f32 %v1069_v21, %v1068_v19  ;;  %v271_v23 = vadd.f32 %v1032_v20, %v989_v17  ;;  %v1033_v25 = vpop.f32.mrb[2].mxu0 }
  0xfc   :  { %v1034_v26 = vpop.f32.mrb[3].mxu0 }
  0xfd   :  { %v346_v24 = vadd.f32 %v1070_v22, %v271_v23  ;;  %v1071_v27 = vpop.f32.mrb[2].mxu1  ;;  %v1035_v28 = vadd.f32 %v1034_v26, %v1033_v25 }
  0xfe   :  { %v1072_v29 = vpop.f32.mrb[3].mxu1 }
  0xff   :  { %v1073_v30 = vadd.f32 %v1072_v29, %v1071_v27  ;;  %v276_v31 = vadd.f32 %v1035_v28, %v989_v17 }
 0x101   :  { %v351_v32 = vadd.f32 %v1073_v30, %v276_v31 }
 0x117   :  { %v1106_v33 = vpop.f32.mrb[4].mxu0 }
 0x118   :  { %v1107_v34 = vpop.f32.mrb[5].mxu0 }
 0x119   :  { %v1144_v35 = vpop.f32.mrb[4].mxu1  ;;  %v1108_v36 = vadd.f32 %v1107_v34, %v1106_v33 }
 0x11a   :  { %v1145_v37 = vpop.f32.mrb[5].mxu1 }
 0x11b   :  { %v1146_v38 = vadd.f32 %v1145_v37, %v1144_v35  ;;  %v421_v39 = vadd.f32 %v1108_v36, %v346_v24  ;;  %v1109_v40 = vpop.f32.mrb[6].mxu0  ;;  %v590_v36 = vlaneseq }
 0x11c   :  { %v1110_v41 = vpop.f32.mrb[7].mxu0 }
 0x11d   :  { %v1147_v42 = vpop.f32.mrb[6].mxu1  ;;  %v1111_v43 = vadd.f32 %v1110_v41, %v1109_v40  ;;  %v496_v45 = vadd.f32 %v1146_v38, %v421_v39  ;;  %v591_v41 = vshrl.u32 %v590_v36, 7 }
 0x11e   :  { %v1148_v44 = vpop.f32.mrb[7].mxu1 }
 0x11f   :  { %v1149_v46 = vadd.f32 %v1148_v44, %v1147_v42  ;;  %v426_v47 = vadd.f32 %v1111_v43, %v351_v32  ;;  %v596_v53 = vsub.s32 1, %v591_v41 }
 0x121   :  { %v501_v48 = vadd.f32 %v1149_v46, %v426_v47  ;;  %v2174_v49 = vpop.f32.mrb[8].mxu1  ;;  %v592_v46 = vsub.s32 0, %v591_v41  ;;  %v597_v55 = vrot.slane %v588_v51, %v596_v53 }
 0x122   :  { %v2176_v50 = vpop.f32.mrb[9].mxu1 }
 0x123   :  { %v593_v52 = vrot.slane %v588_v51, %v592_v46 }
 0x125   :  { %v671_v54 = vadd.f32 %v2174_v49, %v593_v52 }
 0x137   :  { %v1238_v58 = vpop.f32.mrb[8].mxu0 }
 0x138   :  { %v576_v61 = vadd.f32 %v1238_v58, %v501_v48  ;;  %v570_v62 = vpop.f32.mrb[9].mxu0 }
 0x139   :  { %v571_v63 = vadd.f32 %v570_v62, %v496_v45 }
 0x13a   :  { %v687_v0 = vadd.f32 %v685_v56, %v576_v61  ;;  %v839_v1 = vadd.f32 %v837_v57, %v576_v61  ;;  %v716_v56 = vrot.slane %v671_v54, %v592_v46  ;;  %v673_v57 = vadd.f32 %v2176_v50, %v597_v55 }
 0x13b   :  { %v686_v2 = vadd.f32 %v684_v59, %v571_v63  ;;  %v838_v3 = vadd.f32 %v836_v60, %v571_v63  ;;  %v867_v59 = vrot.slane %v671_v54, %v596_v53 }
 0x13d   :  { %v688_v4 = vadd.f32 %v687_v0, %v686_v2  ;;  %v840_v5 = vadd.f32 %v839_v1, %v838_v3 }
 0x13f   :  { %v689_v6 = vrot.slane %v688_v4, 4  ;;  %v841_v7 = vrot.slane %v840_v5, 4 }
 0x141   :  { %v690_v8 = vadd.f32 %v689_v6, %v688_v4  ;;  %v842_v9 = vadd.f32 %v841_v7, %v840_v5  ;;  %v873_v6 = vrot.slane %v673_v57, %v596_v53 }
 0x143   :  { %v691_v10 = vrot.slane %v690_v8, 2  ;;  %v843_v11 = vrot.slane %v842_v9, 2 }
 0x145   :  { %v692_v12 = vadd.f32 %v691_v10, %v690_v8  ;;  %v844_v13 = vadd.f32 %v843_v11, %v842_v9 }
 0x147   :  { %v693_v14 = vrot.slane %v692_v12, 1  ;;  %v845_v15 = vrot.slane %v844_v13, 1 }
 0x149   :  { %v694_v16 = vadd.f32 %v693_v14, %v692_v12  ;;  %v846_v17 = vadd.f32 %v845_v15, %v844_v13 }
 0x14b   :  { %v696_v18 = vmul.f32 0.0625, %v694_v16  ;;  %v847_v19 = vmul.f32 0.0625, %v846_v17  ;;  %v992_v17 = vld [vmem:[%s2222_s9] ss:$0 sm:$0xff] }
 0x14d   :  { %v697_v20 = vsub.f32 %v686_v2, %v696_v18  ;;  %v698_v21 = vsub.f32 %v687_v0, %v696_v18  ;;  %v848_v22 = vsub.f32 %v838_v3, %v847_v19  ;;  %v849_v23 = vsub.f32 %v839_v1, %v847_v19 }
 0x14e   :  { %v722_v3 = vrot.slane %v673_v57, %v592_v46 }
 0x14f   :  { %v699_v24 = vmul.f32 %v697_v20, %v697_v20  ;;  %v700_v25 = vmul.f32 %v698_v21, %v698_v21  ;;  %v850_v26 = vmul.f32 %v848_v22, %v848_v22  ;;  %v851_v27 = vmul.f32 %v849_v23, %v849_v23 }
 0x151   :  { %v701_v28 = vadd.f32 %v700_v25, %v699_v24  ;;  %v852_v29 = vadd.f32 %v851_v27, %v850_v26 }
 0x153   :  { %v702_v30 = vrot.slane %v701_v28, 4  ;;  %v853_v31 = vrot.slane %v852_v29, 4 }
 0x155   :  { %v703_v32 = vadd.f32 %v702_v30, %v701_v28  ;;  %v854_v33 = vadd.f32 %v853_v31, %v852_v29 }
 0x157   :  { %v704_v34 = vrot.slane %v703_v32, 2  ;;  %v855_v35 = vrot.slane %v854_v33, 2 }
 0x159   :  { %v705_v37 = vadd.f32 %v704_v34, %v703_v32  ;;  %v856_v38 = vadd.f32 %v855_v35, %v854_v33 }
 0x15b   :  { %v706_v39 = vrot.slane %v705_v37, 1  ;;  %v857_v40 = vrot.slane %v856_v38, 1 }
 0x15d   :  { %v707_v42 = vadd.f32 %v706_v39, %v705_v37  ;;  %v858_v43 = vadd.f32 %v857_v40, %v856_v38 }
 0x15f   :  { %v708_v44 = vmul.f32 0.0625, %v707_v42  ;;  %v859_v45 = vmul.f32 0.0625, %v858_v43 }
 0x161   :  { %v709_v47 = vadd.f32 1e-05, %v708_v44  ;;  %v860_v48 = vadd.f32 1e-05, %v859_v45 }
 0x163   :  { %1542 = vrsqrt.f32 %v709_v47 }
 0x164   :  { %1544 = vrsqrt.f32 %v860_v48 }
 0x16d   :  { %v1543_v58 = vpop.eup %1542 }
 0x16e   :  { %v1545_v60 = vpop.eup %1544  ;;  %v711_v61 = vmul.f32 %v1543_v58, %v697_v20  ;;  %v712_v62 = vmul.f32 %v1543_v58, %v698_v21 }
 0x16f   :  { %v862_v63 = vmul.f32 %v1545_v60, %v848_v22  ;;  %v863_v0 = vmul.f32 %v1545_v60, %v849_v23 }
 0x170   :  { %v717_v1 = vmul.f32 %v716_v56, %v711_v61  ;;  %v718_v2 = vmul.f32 %v716_v56, %v712_v62 }
 0x171   :  { %v868_v4 = vmul.f32 %v867_v59, %v862_v63  ;;  %v869_v5 = vmul.f32 %v867_v59, %v863_v0 }
 0x172   :  { %v723_v7 = vadd.f32 %v722_v3, %v717_v1  ;;  %v724_v8 = vadd.f32 %v722_v3, %v718_v2 }
 0x173   :  { %v874_v49 = vadd.f32 %v873_v6, %v868_v4  ;;  %v875_v9 = vadd.f32 %v873_v6, %v869_v5 }
 0x174   :  { %vm725_vm1 = vcmp.gt.f32.partialorder %v723_v7, 0.0  ;;  %v727_v10 = vmul.f32 0.2, %v723_v7  ;;  %vm726_vm2 = vcmp.gt.f32.partialorder %v724_v8, 0.0  ;;  %v728_v50 = vmul.f32 0.2, %v724_v8 }
 0x175   :  { %vm876_vm3 = vcmp.gt.f32.partialorder %v874_v49, 0.0  ;;  %v878_v11 = vmul.f32 0.2, %v874_v49  ;;  %vm877_vm4 = vcmp.gt.f32.partialorder %v875_v9, 0.0  ;;  %v879_v12 = vmul.f32 0.2, %v875_v9 }
 0x176   :  { %v729_v13 = vsel %vm725_vm1, %v723_v7, %v727_v10  ;;  %v730_v14 = vsel %vm726_vm2, %v724_v8, %v728_v50 }
 0x177   :  { %1271 = vmatprep.mubr.f32.mxu1 %v729_v13  ;;  %v880_v15 = vsel %vm876_vm3, %v874_v49, %v878_v11  ;;  %v881_v16 = vsel %vm877_vm4, %v875_v9, %v879_v12 }
 0x178   :  { %1306 = vmatprep.mubr.f32.mxu0 %v880_v15  ;;  %1272 = vmatmul.mubr.f32.vlgmr.msra.gmra.mrb[10].mxu1 %v730_v14 }
 0x179   :  { %1307 = vmatmul.mubr.f32.vlgmr.msra.gmra.mrb[10].mxu0 %v881_v16 }
 0x24b   :  { %v1273_v18 = vpop.f32.mrb[10].mxu1 }
 0x24c   :  { %v826_v19 = vadd.f32 %v1273_v18, %v992_v17  ;;  %v1308_v20 = vpop.f32.mrb[10].mxu0  ;;  %v820_v21 = vpop.f32.mrb[11].mxu1 }
 0x24d   :  { %v977_v22 = vadd.f32 %v1308_v20, %v992_v17  ;;  %v821_v23 = vadd.f32 %v992_v17, %v820_v21  ;;  %v971_v24 = vpop.f32.mrb[11].mxu0 }
 0x24e   :  { %1546 = vtanh.f32 %v826_v19  ;;  %v972_v25 = vadd.f32 %v992_v17, %v971_v24 }
 0x24f   :  { %1548 = vtanh.f32 %v977_v22 }
 0x250   :  { %1550 = vtanh.f32 %v821_v23 }
 0x251   :  { %1552 = vtanh.f32 %v972_v25 }
 0x258   :  { %v1547_v26 = vpop.eup %1546 }
 0x259   :  { %v1549_v27 = vpop.eup %1548  ;;  %832 = vst [vmem:[%s2223_s10 + $0x8] sm:$0xff] %v1547_v26 }
 0x25a   :  { %v1551_v28 = vpop.eup %1550  ;;  %997 = vst [vmem:[%s2223_s10 + $0x18] sm:$0xff] %v1549_v27 }
 0x25b   :  { %v1553_v29 = vpop.eup %1552  ;;  %831 = vst [vmem:[%s2223_s10] sm:$0xff] %v1551_v28 }
 0x25c   :  { %996 = vst [vmem:[%s2223_s10 + $0x10] sm:$0xff] %v1553_v29 }

</bundles_post_ra>
